<compile_context>
chip_gen: v7x
topology: tpu7x:2x2x1
jax: 0.10.0
libtpu: 0.0.40
codegen_flags: <defaults>
</compile_context>

<pallas_src>
import functools

import jax
import jax.numpy as jnp
from jax.experimental import pallas as pl
from jax.experimental.pallas import tpu as pltpu


# ----------------------------- Pallas kernels -------------------------------

def _fake_quant_kernel(x_ref, o_ref, *, qmax: float):
    """Per-row symmetric fake quantization: q = round(x/s) clipped, y = q*s."""
    x = x_ref[...].astype(jnp.float32)                       # [tm, cols_p]
    absmax = jnp.max(jnp.abs(x), axis=-1, keepdims=True)     # [tm, 1] (XLU reduce)
    scale = jnp.maximum(absmax, 1e-8) / qmax                 # per-row scale
    # Exact reciprocal: approx=True can flip a quantization level at the 0.5
    # rounding boundary and the [tm, 1] recip is not on the critical path.
    inv_scale = pl.reciprocal(scale, approx=False)
    q = jnp.clip(jnp.round(x * inv_scale), -qmax, qmax)      # integer grid
    y = q * scale                                            # dequantize
    o_ref[...] = y.astype(o_ref.dtype)


def _cast_kernel(x_ref, o_ref):
    """Pure precision cast (e.g. fp32 -> bf16)."""
    o_ref[...] = x_ref[...].astype(o_ref.dtype)


# ------------------------------ Python wrapper -------------------------------

_FLOAT_DTYPES = {
    "fp32": jnp.float32,
    "float32": jnp.float32,
    "fp16": jnp.float16,
    "float16": jnp.float16,
    "bf16": jnp.bfloat16,
    "bfloat16": jnp.bfloat16,
}

_INT_QMAX = {
    "int8": 127.0,
    "int4": 7.0,
    "int2": 1.0,
}

_TILE_TARGET_BYTES = 1 << 20  # ~1 MiB per tile buffer; safe on v5e/v6e/v7x VMEM.


def _round_up(x: int, m: int) -> int:
    return ((x + m - 1) // m) * m


def _convert(x: jax.Array, *, output_precision: str, dequant_dtype) -> jax.Array:
    B, C, H, W = x.shape
    rows, cols = B * C, H * W
    x2d = x.reshape(rows, cols)

    # --- select kernel / output dtype ---------------------------------------
    if output_precision in _INT_QMAX:
        # Fake-quantize to the integer grid, keep dequantized float values
        # (standard QAT-style precision transition).  `dequant_dtype` can be
        # set to bf16 to cut HBM writeback when downstream tolerates it.
        out_dtype = jnp.dtype(dequant_dtype)
        kernel = functools.partial(_fake_quant_kernel, qmax=_INT_QMAX[output_precision])
        flops_per_elem = 6
    else:
        # TODO(synk): fp8 target precisions would need a float8 dtype /
        # pltpu.stochastic_round; not modeled here (defaults to fp32).
        out_dtype = jnp.dtype(_FLOAT_DTYPES.get(output_precision, jnp.float32))
        kernel = _cast_kernel
        flops_per_elem = 1

    # --- lane-dense / (8,128)-aligned 2-D layout -----------------------------
    cols_p = max(128, _round_up(cols, 128))   # lane-dense stores (no vst.msk)
    rows_p = _round_up(rows, 8)               # sublane alignment
    if (cols_p != cols) or (rows_p != rows):
        x2d = jnp.pad(x2d, ((0, rows_p - rows), (0, cols_p - cols)))

    # --- row tiling sized for scoped VMEM ------------------------------------
    bytes_per_elem = max(x2d.dtype.itemsize, out_dtype.itemsize)
    budget_rows = max(8, (_TILE_TARGET_BYTES // (cols_p * bytes_per_elem)) // 8 * 8)
    tm = min(rows_p, budget_rows)
    grid = (pl.cdiv(rows_p, tm),)

    in_bytes = x2d.dtype.itemsize
    out_bytes = out_dtype.itemsize

    # Alias input HBM buffer to the output when shapes/dtypes match
    # (fp32 -> fp32 dequantized path); halves the op's HBM footprint.
    io_alias = {0: 0} if x2d.dtype == out_dtype else {}

    y2d = pl.pallas_call(
        kernel,
        out_shape=jax.ShapeDtypeStruct((rows_p, cols_p), out_dtype),
        grid_spec=pltpu.PrefetchScalarGridSpec(
            num_scalar_prefetch=0,
            grid=grid,
            in_specs=[pl.BlockSpec((tm, cols_p), lambda i: (i, 0))],
            out_specs=pl.BlockSpec((tm, cols_p), lambda i: (i, 0)),
        ),
        compiler_params=pltpu.CompilerParams(
            dimension_semantics=("parallel",)),
        cost_estimate=pl.CostEstimate(
            flops=flops_per_elem * rows_p * cols_p,
            transcendentals=0,
            bytes_accessed=rows_p * cols_p * (in_bytes + out_bytes)),
        input_output_aliases=io_alias,
    )(x2d)

    # Strip padding and restore NCHW.
    if (cols_p != cols) or (rows_p != rows):
        y2d = y2d[:rows, :cols]
    return y2d.reshape(B, C, H, W)


class ActivationConverter:
    """JAX/Pallas port of the PyTorch ActivationConverter module."""

    def __init__(self, input_precision: str, output_precision: str,
                 dequant_dtype=jnp.float32):
        self.input_precision = input_precision
        self.output_precision = output_precision
        # No learnable parameters in the reference module's __init__.
        self._fn = jax.jit(functools.partial(
            _convert,
            output_precision=output_precision.lower(),
            dequant_dtype=dequant_dtype))

    def __call__(self, x: jax.Array) -> jax.Array:
        return self._fn(x)


# ---------------------------------- main -------------------------------------

if __name__ == "__main__":
    key = jax.random.PRNGKey(0)
    B, C, H, W = 2, 4, 16, 16
    x = jax.random.normal(key, (B, C, H, W), dtype=jnp.float32)

    # fp32 -> int8 precision transition (fake-quant round trip).
    conv_q = ActivationConverter("fp32", "int8")
    y_q = jax.block_until_ready(conv_q(x))

    # fp32 -> bf16 precision transition (pure cast).
    conv_c = ActivationConverter("fp32", "bf16")
    y_c = jax.block_until_ready(conv_c(x))

    # Light sanity checks against pure-JAX references.
    x2d = x.reshape(B * C, H * W)
    scale = jnp.maximum(jnp.max(jnp.abs(x2d), axis=-1, keepdims=True), 1e-8) / 127.0
    ref_q = (jnp.clip(jnp.round(x2d / scale), -127, 127) * scale).reshape(B, C, H, W)
    assert y_q.shape == (B, C, H, W) and y_q.dtype == jnp.float32
    assert jnp.allclose(y_q, ref_q, atol=1e-5)
    assert y_c.shape == (B, C, H, W) and y_c.dtype == jnp.bfloat16
    assert jnp.allclose(y_c.astype(jnp.float32), x, atol=1e-2)

    # Exercise the padded path (rows not a multiple of 8, H*W < 128).
    B2, C2, H2, W2 = 2, 6, 7, 7
    x2 = jax.random.normal(jax.random.PRNGKey(1), (B2, C2, H2, W2), jnp.float32)
    y2 = jax.block_until_ready(ActivationConverter("fp32", "int8")(x2))
    x2r = x2.reshape(B2 * C2, H2 * W2)
    s2 = jnp.maximum(jnp.max(jnp.abs(x2r), axis=-1, keepdims=True), 1e-8) / 127.0
    ref2 = (jnp.clip(jnp.round(x2r / s2), -127, 127) * s2).reshape(B2, C2, H2, W2)
    assert y2.shape == (B2, C2, H2, W2)
    assert jnp.allclose(y2, ref2, atol=1e-5)

    print("KERNEL_OK")
</pallas_src>

<mosaic_0001>
module attributes {stable_mosaic.version = 11 : i64} {
  func.func @_fake_quant_kernel(%arg0: i32, %arg1: memref<8x256xf32, #tpu.memory_space<vmem>>, %arg2: memref<8x256xf32, #tpu.memory_space<vmem>>) attributes {dimension_semantics = [#tpu.dimension_semantics<parallel>], iteration_bounds = array<i64: 1>, scalar_prefetch = 0 : i64, scratch_operands = 0 : i64, tpu.core_type = #tpu.core_type<tc>, window_params = [{transform_indices = @transform_0, window_bounds = array<i64: 8, 256>}, {transform_indices = @transform_1, window_bounds = array<i64: 8, 256>}]} {
    %c0 = arith.constant 0 : index
    %c0_0 = arith.constant 0 : index
    %0 = vector.load %arg1[%c0, %c0_0] : memref<8x256xf32, #tpu.memory_space<vmem>>, vector<8x256xf32>
    %1 = math.absf %0 : vector<8x256xf32>
    %cst = arith.constant dense<0xFF800000> : vector<8xf32>
    %2 = vector.multi_reduction <maximumf>, %1, %cst [1] : vector<8x256xf32> to vector<8xf32>
    %3 = vector.shape_cast %2 : vector<8xf32> to vector<8x1xf32>
    %cst_1 = arith.constant 9.99999993E-9 : f32
    %4 = vector.broadcast %cst_1 : f32 to vector<8x1xf32>
    %5 = arith.maximumf %3, %4 : vector<8x1xf32>
    %cst_2 = arith.constant 1.270000e+02 : f32
    %6 = vector.broadcast %cst_2 : f32 to vector<8x1xf32>
    %7 = arith.divf %5, %6 : vector<8x1xf32>
    %8 = tpu.reciprocal %7 : vector<8x1xf32> -> vector<8x1xf32>
    %9 = vector.broadcast %8 : vector<8x1xf32> to vector<8x256xf32>
    %10 = arith.mulf %0, %9 : vector<8x256xf32>
    %11 = math.roundeven %10 : vector<8x256xf32>
    %cst_3 = arith.constant -1.270000e+02 : f32
    %cst_4 = arith.constant 1.270000e+02 : f32
    %12 = vector.broadcast %cst_3 : f32 to vector<8x256xf32>
    %13 = arith.maximumf %12, %11 : vector<8x256xf32>
    %14 = vector.broadcast %cst_4 : f32 to vector<8x256xf32>
    %15 = arith.minimumf %14, %13 : vector<8x256xf32>
    %16 = vector.broadcast %7 : vector<8x1xf32> to vector<8x256xf32>
    %17 = arith.mulf %15, %16 : vector<8x256xf32>
    %c0_5 = arith.constant 0 : index
    %c0_6 = arith.constant 0 : index
    %18 = vector.load %arg2[%c0_5, %c0_6] : memref<8x256xf32, #tpu.memory_space<vmem>>, vector<8x256xf32>
    tpu.vector_store %arg2[%c0_5, %c0_6], %17 {strides = array<i32>} : memref<8x256xf32, #tpu.memory_space<vmem>>, vector<8x256xf32>,
    return
  }
  func.func @transform_0(%arg0: i32) -> (i32, i32) {
    %c0_i32 = arith.constant 0 : i32
    %c0_i32_0 = arith.constant 0 : i32
    return %arg0, %c0_i32 : i32, i32
  }
  func.func @transform_1(%arg0: i32) -> (i32, i32) {
    %c0_i32 = arith.constant 0 : i32
    %c0_i32_0 = arith.constant 0 : i32
    return %arg0, %c0_i32 : i32, i32
  }
}

</mosaic_0001>

<bundles_post_ra>
// kernel: _convert.1
= control target key start
LH: loop header
LB: loop body
LE: loop exit
PB: predicated region body
PF: predicated region fallthrough
CT: control target
= control target key end

     0   :  { %s63_s0 = inlined_call_operand.vmem [shape: f32[8,256], index: 0, kind: input, shape index: {}, may-alias: {0,1}]   ;;  %s64_s1 = inlined_call_operand.vmem [shape: f32[8,256], index: 1, kind: output, shape index: {}, may-alias: {0,1}]  }
   0x1   :  { %v8_v0 = vld [vmem:[%s63_s0] sm:$0xff]  ;;  %v9_v1 = vld [vmem:[%s63_s0 + $0x8] sm:$0xff] }
   0x2   :  { %v10_v2 = vand.u32 2147483647, %v8_v0  ;;  %v11_v3 = vand.u32 2147483647, %v9_v1 }
   0x4   :  { %v12_v4 = vmax.f32.f32 %v10_v2, %v11_v3 }
   0x6   :  { %13 = vmax.xlane.f32.xlu0 %v12_v4 }
  0x93   :  { %v14_v5 = vpop.xlane.xlu0 %13 }
  0x94   :  { %v15_v6 = vmax.f32 %v14_v5, 1e-08 }
  0x96   :  { %v17_v7 = vmul.f32 0.007874016, %v15_v6 }
  0x98   :  { %39 = vrcp.f32 %v17_v7 }
  0xa2   :  { %v40_v8 = vpop.eup %39 }
  0xa3   :  { %v19_v9 = vmul.f32 %v40_v8, %v8_v0  ;;  %v20_v10 = vmul.f32 %v40_v8, %v9_v1 }
  0xa5   :  { %v37_v11 = vround.rtne.f32 %v19_v9  ;;  %v38_v12 = vround.rtne.f32 %v20_v10 }
  0xa7   :  { %v35_v13 = vclamps-f32 %v37_v11, 127.0  ;;  %v36_v14 = vclamps-f32 %v38_v12, 127.0 }
  0xa9   :  { %v27_v15 = vmul.f32 %v35_v13, %v17_v7  ;;  %v28_v16 = vmul.f32 %v36_v14, %v17_v7 }
  0xab   :  { %29 = vst [vmem:[%s64_s1] sm:$0xff] %v27_v15  ;;  %30 = vst [vmem:[%s64_s1 + $0x8] sm:$0xff] %v28_v16 }

</bundles_post_ra>
